<compile_context>
chip_gen: v7x
topology: tpu7x:2x2x1
jax: 0.10.0
libtpu: 0.0.40
codegen_flags: <defaults>
</compile_context>

<pallas_src>
import jax
import jax.numpy as jnp
import numpy as np
from jax.experimental import pallas as pl
from jax.experimental.pallas import tpu as pltpu

PATCH = 32
HIDDEN = 64
HIDDEN_PAD = 128   # pad hidden to full lane width (zero-padded, exact result)
LANE = 128


def _round_up(x, m):
    return ((x + m - 1) // m) * m


# ----------------------------------------------------------------------------
# Pallas kernel: one M-tile of  leaky_relu(P @ W1 + b1, 0.1) @ W2 + b2
# ----------------------------------------------------------------------------
def _patchifier_kernel(p_ref, w1_ref, b1_ref, w2_ref, b2_ref, o_ref):
    # p_ref : (TILE_M, K)        bf16 flattened patches
    # w1_ref: (K, HIDDEN_PAD)    bf16 conv1 weight (zero-padded columns)
    # b1_ref: (1, HIDDEN_PAD)    f32  conv1 bias   (zero-padded)
    # w2_ref: (HIDDEN_PAD, Opad) bf16 conv2 weight (zero-padded)
    # b2_ref: (1, Opad)          f32  conv2 bias   (zero-padded)
    # o_ref : (TILE_M, Opad)     f32
    h = jnp.dot(p_ref[...], w1_ref[...], preferred_element_type=jnp.float32)
    h = h + b1_ref[...]
    h = jnp.where(h >= 0.0, h, 0.1 * h)                    # LeakyReLU(0.1)
    o = jnp.dot(h.astype(jnp.bfloat16), w2_ref[...],
                preferred_element_type=jnp.float32)
    o_ref[...] = o + b2_ref[...]


def _patchifier_matmul(patches, w1, b1, w2, b2):
    """patches: (M_pad, K) bf16; w1: (K, Hpad) bf16; w2: (Hpad, Opad) bf16."""
    M_pad, K = patches.shape
    Opad = w2.shape[1]
    Hpad = w1.shape[1]

    # Tile M so that 2 (double-buffered) input tiles stay under ~16 MiB; this
    # fits v7x's 64 MiB VMEM (32 MiB scoped default) as well as v5e/v6e.
    tile_m = 512
    bytes_per_row = K * 2  # bf16
    while tile_m > 16 and 2 * tile_m * bytes_per_row > 16 * 1024 * 1024:
        tile_m //= 2
    tile_m = min(tile_m, M_pad)
    assert M_pad % tile_m == 0
    grid = (M_pad // tile_m,)

    cost = pl.CostEstimate(
        flops=2 * M_pad * K * Hpad + 2 * M_pad * Hpad * Opad,
        transcendentals=0,
        bytes_accessed=M_pad * K * 2 + K * Hpad * 2 + Hpad * Opad * 2
        + M_pad * Opad * 4 + (Hpad + Opad) * 4,
    )

    return pl.pallas_call(
        _patchifier_kernel,
        out_shape=jax.ShapeDtypeStruct((M_pad, Opad), jnp.float32),
        grid_spec=pltpu.PrefetchScalarGridSpec(
            num_scalar_prefetch=0,
            grid=grid,
            in_specs=[
                pl.BlockSpec((tile_m, K), lambda i: (i, 0)),   # patches tile
                pl.BlockSpec((K, Hpad), lambda i: (0, 0)),     # W1 (resident)
                pl.BlockSpec((1, Hpad), lambda i: (0, 0)),     # b1 (resident)
                pl.BlockSpec((Hpad, Opad), lambda i: (0, 0)),  # W2 (resident)
                pl.BlockSpec((1, Opad), lambda i: (0, 0)),     # b2 (resident)
            ],
            out_specs=pl.BlockSpec((tile_m, Opad), lambda i: (i, 0)),
        ),
        compiler_params=pltpu.CompilerParams(
            dimension_semantics=("parallel",),      # split M across v7x's 2 TCs
            vmem_limit_bytes=48 * 1024 * 1024,      # < v7x physical, > v5e default
        ),
        cost_estimate=cost,
    )(patches, w1, b1, w2, b2)


# ----------------------------------------------------------------------------
# Glue: patch extraction / weight flattening / output reshape (plain JAX).
# The im2col transpose is fused by XLA with the bf16 downcast into one pass.
# ----------------------------------------------------------------------------
def patchifier_forward(x, params):
    """x: (N, C, H, W) float32 NCHW. Returns (N, out_ch, H//32, W//32) f32."""
    w1, b1, w2, b2 = params  # PyTorch-shaped: (64,C,32,32),(64,),(O,64,1,1),(O,)
    N, C, H, W = x.shape
    if H % PATCH != 0 or W % PATCH != 0:
        raise ValueError(f"H and W must be multiples of {PATCH}, got {(H, W)}")
    Hp, Wp = H // PATCH, W // PATCH
    out_ch = w2.shape[0]
    K = C * PATCH * PATCH
    M = N * Hp * Wp

    # Non-overlapping 32x32 patches, flattened in (c, kh, kw) order, bf16.
    xp = x.reshape(N, C, Hp, PATCH, Wp, PATCH)
    xp = xp.transpose(0, 2, 4, 1, 3, 5)                      # N, Hp, Wp, C, kh, kw
    patches = xp.reshape(M, K).astype(jnp.bfloat16)          # (M, K)

    # Pad M up to a multiple of 16 (bf16 sublane packing / tile granularity).
    M_pad = _round_up(M, 16)
    tile_cap = 512
    while tile_cap > 16 and 2 * tile_cap * K * 2 > 16 * 1024 * 1024:
        tile_cap //= 2
    M_pad = _round_up(M_pad, min(tile_cap, M_pad))
    if M_pad != M:
        patches = jnp.pad(patches, ((0, M_pad - M), (0, 0)))

    # Flatten conv weights to matmul form; zero-pad hidden -> 128 lanes and
    # out_ch -> multiple of 128 so matmuls/stores are lane-dense.
    Opad = _round_up(max(out_ch, LANE), LANE)
    w1_mat = jnp.zeros((K, HIDDEN_PAD), jnp.bfloat16)
    w1_mat = w1_mat.at[:, :HIDDEN].set(w1.reshape(HIDDEN, K).T.astype(jnp.bfloat16))
    b1_row = jnp.zeros((1, HIDDEN_PAD), jnp.float32)
    b1_row = b1_row.at[:, :HIDDEN].set(b1.reshape(1, HIDDEN))
    w2_mat = jnp.zeros((HIDDEN_PAD, Opad), jnp.bfloat16)
    w2_mat = w2_mat.at[:HIDDEN, :out_ch].set(
        w2.reshape(out_ch, HIDDEN).T.astype(jnp.bfloat16))
    b2_row = jnp.zeros((1, Opad), jnp.float32)
    b2_row = b2_row.at[:, :out_ch].set(b2.reshape(1, out_ch))

    out_flat = _patchifier_matmul(patches, w1_mat, b1_row, w2_mat, b2_row)

    out = out_flat[:M, :out_ch].reshape(N, Hp, Wp, out_ch).transpose(0, 3, 1, 2)
    return out


# ----------------------------------------------------------------------------
# Deterministic parameter init (PyTorch-default-style uniform, fixed PRNG key)
# ----------------------------------------------------------------------------
def init_params(key, in_ch, out_ch):
    k1, k2, k3, k4 = jax.random.split(key, 4)
    fan1 = in_ch * PATCH * PATCH
    bound1 = 1.0 / np.sqrt(fan1)
    w1 = jax.random.uniform(k1, (HIDDEN, in_ch, PATCH, PATCH),
                            jnp.float32, -bound1, bound1)
    b1 = jax.random.uniform(k2, (HIDDEN,), jnp.float32, -bound1, bound1)
    fan2 = HIDDEN
    bound2 = 1.0 / np.sqrt(fan2)
    w2 = jax.random.uniform(k3, (out_ch, HIDDEN, 1, 1),
                            jnp.float32, -bound2, bound2)
    b2 = jax.random.uniform(k4, (out_ch,), jnp.float32, -bound2, bound2)
    return (w1, b1, w2, b2)


# ----------------------------------------------------------------------------
# Pure-JAX reference (lax.conv) for correctness check
# ----------------------------------------------------------------------------
def patchifier_reference(x, params):
    w1, b1, w2, b2 = params
    h = jax.lax.conv_general_dilated(
        x, w1, window_strides=(PATCH, PATCH), padding="VALID",
        dimension_numbers=("NCHW", "OIHW", "NCHW"))
    h = h + b1.reshape(1, -1, 1, 1)
    h = jnp.where(h >= 0.0, h, 0.1 * h)
    o = jax.lax.conv_general_dilated(
        h, w2, window_strides=(1, 1), padding="VALID",
        dimension_numbers=("NCHW", "OIHW", "NCHW"))
    return o + b2.reshape(1, -1, 1, 1)


if __name__ == "__main__":
    key = jax.random.PRNGKey(0)
    kx, kp = jax.random.split(key)

    # Small shapes consistent with the module: kernel/stride = 32, so spatial
    # must be a multiple of 32.  batch=2, in_ch=4, spatial=64 -> 2x2 patches.
    N, C, H, W = 2, 4, 64, 64
    out_ch = 1

    x = jax.random.normal(kx, (N, C, H, W), jnp.float32)
    params = init_params(kp, C, out_ch)

    fwd = jax.jit(patchifier_forward)
    out = jax.block_until_ready(fwd(x, params))
    assert out.shape == (N, out_ch, H // PATCH, W // PATCH), out.shape

    ref = jax.block_until_ready(patchifier_reference(x, params))
    # bf16 MXU inputs with f32 accumulation -> loose-ish tolerance vs f32 ref.
    if not np.allclose(np.asarray(out), np.asarray(ref), rtol=2e-2, atol=2e-2):
        raise AssertionError("Pallas Patchifier output mismatch vs reference")

    print("KERNEL_OK")
</pallas_src>

<mosaic_0001>
module attributes {stable_mosaic.version = 11 : i64} {
  func.func @_patchifier_kernel(%arg0: i32, %arg1: memref<16x4096xbf16, #tpu.memory_space<vmem>>, %arg2: memref<4096x128xbf16, #tpu.memory_space<vmem>>, %arg3: memref<1x128xf32, #tpu.memory_space<vmem>>, %arg4: memref<128x128xbf16, #tpu.memory_space<vmem>>, %arg5: memref<1x128xf32, #tpu.memory_space<vmem>>, %arg6: memref<16x128xf32, #tpu.memory_space<vmem>>) attributes {dimension_semantics = [#tpu.dimension_semantics<parallel>], iteration_bounds = array<i64: 1>, scalar_prefetch = 0 : i64, scratch_operands = 0 : i64, tpu.core_type = #tpu.core_type<tc>, window_params = [{transform_indices = @transform_0, window_bounds = array<i64: 16, 4096>}, {pipeline_mode = #tpu.pipeline_mode<synchronous>, transform_indices = @transform_1, window_bounds = array<i64: 4096, 128>}, {pipeline_mode = #tpu.pipeline_mode<synchronous>, transform_indices = @transform_2, window_bounds = array<i64: 1, 128>}, {pipeline_mode = #tpu.pipeline_mode<synchronous>, transform_indices = @transform_3, window_bounds = array<i64: 128, 128>}, {pipeline_mode = #tpu.pipeline_mode<synchronous>, transform_indices = @transform_4, window_bounds = array<i64: 1, 128>}, {transform_indices = @transform_5, window_bounds = array<i64: 16, 128>}]} {
    %c0 = arith.constant 0 : index
    %c0_0 = arith.constant 0 : index
    %0 = vector.load %arg1[%c0, %c0_0] : memref<16x4096xbf16, #tpu.memory_space<vmem>>, vector<16x4096xbf16>
    %c0_1 = arith.constant 0 : index
    %c0_2 = arith.constant 0 : index
    %1 = vector.load %arg2[%c0_1, %c0_2] : memref<4096x128xbf16, #tpu.memory_space<vmem>>, vector<4096x128xbf16>
    %cst = arith.constant dense<0.000000e+00> : vector<16x128xf32>
    %2 = tpu.matmul %0, %1, %cst {dimension_numbers = #tpu.dot_dimension_numbers<[1], [0], [0], [1], [0, 0, 1, 1], [], []>} : vector<16x4096xbf16>, vector<4096x128xbf16>, vector<16x128xf32> -> vector<16x128xf32>
    %c0_3 = arith.constant 0 : index
    %c0_4 = arith.constant 0 : index
    %3 = vector.load %arg3[%c0_3, %c0_4] : memref<1x128xf32, #tpu.memory_space<vmem>>, vector<1x128xf32>
    %4 = vector.broadcast %3 : vector<1x128xf32> to vector<16x128xf32>
    %5 = arith.addf %2, %4 : vector<16x128xf32>
    %cst_5 = arith.constant 0.000000e+00 : f32
    %6 = vector.broadcast %cst_5 : f32 to vector<16x128xf32>
    %7 = arith.cmpf oge, %5, %6 : vector<16x128xf32>
    %cst_6 = arith.constant 1.000000e-01 : f32
    %8 = vector.broadcast %cst_6 : f32 to vector<16x128xf32>
    %9 = arith.mulf %8, %5 : vector<16x128xf32>
    %10 = arith.select %7, %5, %9 : vector<16x128xi1>, vector<16x128xf32>
    %11 = arith.truncf %10 : vector<16x128xf32> to vector<16x128xbf16>
    %c0_7 = arith.constant 0 : index
    %c0_8 = arith.constant 0 : index
    %12 = vector.load %arg4[%c0_7, %c0_8] : memref<128x128xbf16, #tpu.memory_space<vmem>>, vector<128x128xbf16>
    %cst_9 = arith.constant dense<0.000000e+00> : vector<16x128xf32>
    %13 = tpu.matmul %11, %12, %cst_9 {dimension_numbers = #tpu.dot_dimension_numbers<[1], [0], [0], [1], [0, 0, 1, 1], [], []>} : vector<16x128xbf16>, vector<128x128xbf16>, vector<16x128xf32> -> vector<16x128xf32>
    %c0_10 = arith.constant 0 : index
    %c0_11 = arith.constant 0 : index
    %14 = vector.load %arg5[%c0_10, %c0_11] : memref<1x128xf32, #tpu.memory_space<vmem>>, vector<1x128xf32>
    %15 = vector.broadcast %14 : vector<1x128xf32> to vector<16x128xf32>
    %16 = arith.addf %13, %15 : vector<16x128xf32>
    %c0_12 = arith.constant 0 : index
    %c0_13 = arith.constant 0 : index
    %17 = vector.load %arg6[%c0_12, %c0_13] : memref<16x128xf32, #tpu.memory_space<vmem>>, vector<16x128xf32>
    tpu.vector_store %arg6[%c0_12, %c0_13], %16 {strides = array<i32>} : memref<16x128xf32, #tpu.memory_space<vmem>>, vector<16x128xf32>,
    return
  }
  func.func @transform_0(%arg0: i32) -> (i32, i32) {
    %c0_i32 = arith.constant 0 : i32
    %c0_i32_0 = arith.constant 0 : i32
    return %arg0, %c0_i32 : i32, i32
  }
  func.func @transform_1(%arg0: i32) -> (i32, i32) {
    %c0_i32 = arith.constant 0 : i32
    %c0_i32_0 = arith.constant 0 : i32
    %c0_i32_1 = arith.constant 0 : i32
    return %c0_i32, %c0_i32_0 : i32, i32
  }
  func.func @transform_2(%arg0: i32) -> (i32, i32) {
    %c0_i32 = arith.constant 0 : i32
    %c0_i32_0 = arith.constant 0 : i32
    %c0_i32_1 = arith.constant 0 : i32
    return %c0_i32, %c0_i32_0 : i32, i32
  }
  func.func @transform_3(%arg0: i32) -> (i32, i32) {
    %c0_i32 = arith.constant 0 : i32
    %c0_i32_0 = arith.constant 0 : i32
    %c0_i32_1 = arith.constant 0 : i32
    return %c0_i32, %c0_i32_0 : i32, i32
  }
  func.func @transform_4(%arg0: i32) -> (i32, i32) {
    %c0_i32 = arith.constant 0 : i32
    %c0_i32_0 = arith.constant 0 : i32
    %c0_i32_1 = arith.constant 0 : i32
    return %c0_i32, %c0_i32_0 : i32, i32
  }
  func.func @transform_5(%arg0: i32) -> (i32, i32) {
    %c0_i32 = arith.constant 0 : i32
    %c0_i32_0 = arith.constant 0 : i32
    return %arg0, %c0_i32 : i32, i32
  }
}

</mosaic_0001>

<bundles_post_ra>
// kernel: patchifier_forward.1
= control target key start
LH: loop header
LB: loop body
LE: loop exit
PB: predicated region body
PF: predicated region fallthrough
CT: control target
= control target key end

     0   :  { %vm3995_vm0 = vmmov 0   ;;  %s4926_s1 = inlined_call_operand.vmem [shape: bf16[4096,128], index: 1, kind: input, shape index: {}]   ;;  %s4927_s0 = inlined_call_operand.vmem [shape: bf16[16,4096], index: 0, kind: input, shape index: {}]   ;;  %s4928_s2 = inlined_call_operand.vmem [shape: f32[1,128], index: 2, kind: input, shape index: {}]   ;;  %s4929_s3 = inlined_call_operand.vmem [shape: bf16[128,128], index: 3, kind: input, shape index: {}]   ;;  %s4930_s4 = inlined_call_operand.vmem [shape: f32[1,128], index: 4, kind: input, shape index: {}]   ;;  %s4931_s5 = inlined_call_operand.vmem [shape: f32[16,128], index: 5, kind: output, shape index: {}]  }
   0x1   :  { %v3730_v0 = vld [vmem:[%s4926_s1 + $0x40] sm:$0xff]   ;;  %v3734_v4 = vld [vmem:[%s4926_s1 + $0x48] sm:$0xff]   ;;  %v3738_v8 = vld [vmem:[%s4926_s1 + $0x50] sm:$0xff]  }
   0x2   :  { %v3731_v1 = vld [vmem:[%s4926_s1 + $0xc0] sm:$0xff]   ;;  %3347 = vmatprep.subr.bf16.mxu0 %v3730_v0  ;;  %v3735_v5 = vld [vmem:[%s4926_s1 + $0xc8] sm:$0xff]   ;;  %v3739_v9 = vld [vmem:[%s4926_s1 + $0xd0] sm:$0xff]  }
   0x3   :  { %v3732_v2 = vld [vmem:[%s4926_s1] sm:$0xff]   ;;  %3369 = vmatprep.subr.bf16.mxu1 %v3731_v1  ;;  %v3736_v6 = vld [vmem:[%s4926_s1 + $0x8] sm:$0xff]   ;;  %v3740_v10 = vld [vmem:[%s4926_s1 + $0x10] sm:$0xff]  }
   0x4   :  { %v3733_v3 = vld [vmem:[%s4926_s1 + $0x80] sm:$0xff]   ;;  %3348 = vmatpush3.bf16.msra.mxu0 %v3732_v2  ;;  %v3737_v7 = vld [vmem:[%s4926_s1 + $0x88] sm:$0xff]   ;;  %v3741_v11 = vld [vmem:[%s4926_s1 + $0x90] sm:$0xff]  }
   0x5   :  { %3370 = vmatpush3.bf16.msra.mxu1 %v3733_v3  ;;  %3349 = vmatprep.subr.bf16.mxu0 %v3734_v4  ;;  %v3742_v12 = vld [vmem:[%s4926_s1 + $0x58] sm:$0xff]   ;;  %v3746_v16 = vld [vmem:[%s4926_s1 + $0x60] sm:$0xff]   ;;  %v3750_v20 = vld [vmem:[%s4926_s1 + $0x68] sm:$0xff]  }
   0x6   :  { %3371 = vmatprep.subr.bf16.mxu1 %v3735_v5  ;;  %v3743_v13 = vld [vmem:[%s4926_s1 + $0xd8] sm:$0xff]   ;;  %v3747_v17 = vld [vmem:[%s4926_s1 + $0xe0] sm:$0xff]   ;;  %v3751_v21 = vld [vmem:[%s4926_s1 + $0xe8] sm:$0xff]  }
   0x7   :  { %v3744_v14 = vld [vmem:[%s4926_s1 + $0x18] sm:$0xff]   ;;  %v3748_v18 = vld [vmem:[%s4926_s1 + $0x20] sm:$0xff]   ;;  %v3752_v22 = vld [vmem:[%s4926_s1 + $0x28] sm:$0xff]  }
   0x8   :  { %3350 = vmatpush3.bf16.msra.mxu0 %v3736_v6  ;;  %v3745_v15 = vld [vmem:[%s4926_s1 + $0x98] sm:$0xff]   ;;  %v3749_v19 = vld [vmem:[%s4926_s1 + $0xa0] sm:$0xff]   ;;  %v3753_v23 = vld [vmem:[%s4926_s1 + $0xa8] sm:$0xff]  }
   0x9   :  { %3372 = vmatpush3.bf16.msra.mxu1 %v3737_v7  ;;  %3351 = vmatprep.subr.bf16.mxu0 %v3738_v8  ;;  %v3754_v24 = vld [vmem:[%s4926_s1 + $0x70] sm:$0xff]   ;;  %v3758_v28 = vld [vmem:[%s4926_s1 + $0x78] sm:$0xff]   ;;  %v21_v32 = vld [vmem:[%s4927_s0] sm:$0xff] }
   0xa   :  { %3373 = vmatprep.subr.bf16.mxu1 %v3739_v9  ;;  %v3755_v25 = vld [vmem:[%s4926_s1 + $0xf0] sm:$0xff]   ;;  %v3759_v29 = vld [vmem:[%s4926_s1 + $0xf8] sm:$0xff]   ;;  %v37_v33 = vld [vmem:[%s4927_s0 + $0x80] sm:$0xff] }
   0xb   :  { %v3756_v26 = vld [vmem:[%s4926_s1 + $0x30] sm:$0xff]   ;;  %v3760_v30 = vld [vmem:[%s4926_s1 + $0x38] sm:$0xff]   ;;  %v22_v34 = vld [vmem:[%s4927_s0 + $0x8] sm:$0xff]  ;;  %v3050_v35 = vcombine.low %v21_v32, %v37_v33  ;;  %v3051_v36 = vcombine.high %v21_v32, %v37_v33 }
   0xc   :  { %3352 = vmatpush3.bf16.msra.mxu0 %v3740_v10  ;;  %v3757_v27 = vld [vmem:[%s4926_s1 + $0xb0] sm:$0xff]   ;;  %v3761_v31 = vld [vmem:[%s4926_s1 + $0xb8] sm:$0xff]   ;;  %v38_v37 = vld [vmem:[%s4927_s0 + $0x88] sm:$0xff] }
   0xd   :  { %3374 = vmatpush3.bf16.msra.mxu1 %v3741_v11  ;;  %3353 = vmatprep.subr.bf16.mxu0 %v3742_v12  ;;  %v3052_v38 = vcombine.low %v22_v34, %v38_v37  ;;  %v3053_v39 = vcombine.high %v22_v34, %v38_v37  ;;  %v3762_v40 = vld [vmem:[%s4926_s1 + $0x140] sm:$0xff]   ;;  %v3766_v44 = vld [vmem:[%s4926_s1 + $0x148] sm:$0xff]   ;;  %v3770_v48 = vld [vmem:[%s4926_s1 + $0x150] sm:$0xff]  }
   0xe   :  { %3375 = vmatprep.subr.bf16.mxu1 %v3743_v13  ;;  %2300 = vmatprep.mubr.bf16.mxu0 %v3051_v36  ;;  %v3763_v41 = vld [vmem:[%s4926_s1 + $0x1c0] sm:$0xff]   ;;  %v3767_v45 = vld [vmem:[%s4926_s1 + $0x1c8] sm:$0xff]   ;;  %v3771_v49 = vld [vmem:[%s4926_s1 + $0x1d0] sm:$0xff]  }
   0xf   :  { %2341 = vmatprep.mubr.bf16.mxu1 %v3053_v39  ;;  %v3764_v42 = vld [vmem:[%s4926_s1 + $0x100] sm:$0xff]   ;;  %v3768_v46 = vld [vmem:[%s4926_s1 + $0x108] sm:$0xff]   ;;  %v3772_v50 = vld [vmem:[%s4926_s1 + $0x110] sm:$0xff]  }
  0x10   :  { %3354 = vmatpush3.bf16.msra.mxu0 %v3744_v14  ;;  %v3765_v43 = vld [vmem:[%s4926_s1 + $0x180] sm:$0xff]   ;;  %v3769_v47 = vld [vmem:[%s4926_s1 + $0x188] sm:$0xff]   ;;  %v3773_v51 = vld [vmem:[%s4926_s1 + $0x190] sm:$0xff]  }
  0x11   :  { %3376 = vmatpush3.bf16.msra.mxu1 %v3745_v15  ;;  %3355 = vmatprep.subr.bf16.mxu0 %v3746_v16  ;;  %v3774_v52 = vld [vmem:[%s4926_s1 + $0x158] sm:$0xff]   ;;  %v3778_v56 = vld [vmem:[%s4926_s1 + $0x160] sm:$0xff]   ;;  %v3782_v60 = vld [vmem:[%s4926_s1 + $0x168] sm:$0xff]  }
  0x12   :  { %3377 = vmatprep.subr.bf16.mxu1 %v3747_v17  ;;  %v3775_v53 = vld [vmem:[%s4926_s1 + $0x1d8] sm:$0xff]   ;;  %v3779_v57 = vld [vmem:[%s4926_s1 + $0x1e0] sm:$0xff]   ;;  %v3783_v61 = vld [vmem:[%s4926_s1 + $0x1e8] sm:$0xff]  }
  0x13   :  { %v3776_v54 = vld [vmem:[%s4926_s1 + $0x118] sm:$0xff]   ;;  %v3780_v58 = vld [vmem:[%s4926_s1 + $0x120] sm:$0xff]   ;;  %v3784_v62 = vld [vmem:[%s4926_s1 + $0x128] sm:$0xff]  }
  0x14   :  { %3356 = vmatpush3.bf16.msra.mxu0 %v3748_v18  ;;  %v3777_v55 = vld [vmem:[%s4926_s1 + $0x198] sm:$0xff]   ;;  %v3781_v59 = vld [vmem:[%s4926_s1 + $0x1a0] sm:$0xff]   ;;  %v3785_v63 = vld [vmem:[%s4926_s1 + $0x1a8] sm:$0xff]  }
  0x15   :  { %3378 = vmatpush3.bf16.msra.mxu1 %v3749_v19  ;;  %3357 = vmatprep.subr.bf16.mxu0 %v3750_v20  ;;  %v3786_v0 = vld [vmem:[%s4926_s1 + $0x170] sm:$0xff]   ;;  %v3790_v4 = vld [vmem:[%s4926_s1 + $0x178] sm:$0xff]   ;;  %v3794_v16 = vld [vmem:[%s4926_s1 + $0x240] sm:$0xff]  }
  0x16   :  { %3379 = vmatprep.subr.bf16.mxu1 %v3751_v21  ;;  %v3787_v1 = vld [vmem:[%s4926_s1 + $0x1f0] sm:$0xff]   ;;  %v3791_v5 = vld [vmem:[%s4926_s1 + $0x1f8] sm:$0xff]   ;;  %v3795_v17 = vld [vmem:[%s4926_s1 + $0x2c0] sm:$0xff]  }
  0x17   :  { %v3788_v2 = vld [vmem:[%s4926_s1 + $0x130] sm:$0xff]   ;;  %v3792_v6 = vld [vmem:[%s4926_s1 + $0x138] sm:$0xff]   ;;  %v3796_v18 = vld [vmem:[%s4926_s1 + $0x200] sm:$0xff]  }
  0x18   :  { %3358 = vmatpush3.bf16.msra.mxu0 %v3752_v22  ;;  %v3789_v3 = vld [vmem:[%s4926_s1 + $0x1b0] sm:$0xff]   ;;  %v3793_v7 = vld [vmem:[%s4926_s1 + $0x1b8] sm:$0xff]   ;;  %v3797_v19 = vld [vmem:[%s4926_s1 + $0x280] sm:$0xff]  }
  0x19   :  { %3380 = vmatpush3.bf16.msra.mxu1 %v3753_v23  ;;  %3359 = vmatprep.subr.bf16.mxu0 %v3754_v24  ;;  %v23_v8 = vld [vmem:[%s4927_s0 + $0x10] sm:$0xff]  ;;  %v24_v12 = vld [vmem:[%s4927_s0 + $0x18] sm:$0xff]  ;;  %v3798_v20 = vld [vmem:[%s4926_s1 + $0x248] sm:$0xff]  }
  0x1a   :  { %3381 = vmatprep.subr.bf16.mxu1 %v3755_v25  ;;  %v39_v9 = vld [vmem:[%s4927_s0 + $0x90] sm:$0xff]  ;;  %v40_v13 = vld [vmem:[%s4927_s0 + $0x98] sm:$0xff]  ;;  %v3799_v21 = vld [vmem:[%s4926_s1 + $0x2c8] sm:$0xff]  }
  0x1b   :  { %v3054_v10 = vcombine.low %v23_v8, %v39_v9  ;;  %v3055_v11 = vcombine.high %v23_v8, %v39_v9  ;;  %v3056_v14 = vcombine.low %v24_v12, %v40_v13  ;;  %v3057_v15 = vcombine.high %v24_v12, %v40_v13  ;;  %v3800_v22 = vld [vmem:[%s4926_s1 + $0x208] sm:$0xff]   ;;  %v3802_v24 = vld [vmem:[%s4926_s1 + $0x250] sm:$0xff]   ;;  %v3810_v32 = vld [vmem:[%s4926_s1 + $0x260] sm:$0xff]  }
  0x1c   :  { %3360 = vmatpush3.bf16.msra.mxu0 %v3756_v26  ;;  %v3801_v23 = vld [vmem:[%s4926_s1 + $0x288] sm:$0xff]   ;;  %v3803_v25 = vld [vmem:[%s4926_s1 + $0x2d0] sm:$0xff]   ;;  %v3811_v33 = vld [vmem:[%s4926_s1 + $0x2e0] sm:$0xff]  }
  0x1d   :  { %3382 = vmatpush3.bf16.msra.mxu1 %v3757_v27  ;;  %3361 = vmatprep.subr.bf16.mxu0 %v3758_v28  ;;  %v3804_v26 = vld [vmem:[%s4926_s1 + $0x210] sm:$0xff]   ;;  %v3806_v28 = vld [vmem:[%s4926_s1 + $0x258] sm:$0xff]   ;;  %v3812_v34 = vld [vmem:[%s4926_s1 + $0x220] sm:$0xff]  }
  0x1e   :  { %3383 = vmatprep.subr.bf16.mxu1 %v3759_v29  ;;  %v3805_v27 = vld [vmem:[%s4926_s1 + $0x290] sm:$0xff]   ;;  %v3807_v29 = vld [vmem:[%s4926_s1 + $0x2d8] sm:$0xff]   ;;  %v3814_v36 = vld [vmem:[%s4926_s1 + $0x268] sm:$0xff]  }
  0x1f   :  { %v3815_v37 = vld [vmem:[%s4926_s1 + $0x2e8] sm:$0xff]   ;;  %v3842_v8 = vld [vmem:[%s4926_s1 + $0x360] sm:$0xff]  }
  0x20   :  { %3362 = vmatpush3.bf16.msra.mxu0 %v3760_v30  ;;  %v3808_v30 = vld [vmem:[%s4926_s1 + $0x218] sm:$0xff]   ;;  %v3817_v39 = vld [vmem:[%s4926_s1 + $0x2a8] sm:$0xff]   ;;  %v3843_v9 = vld [vmem:[%s4926_s1 + $0x3e0] sm:$0xff]  }
  0x21   :  { %3384 = vmatpush3.bf16.msra.mxu1 %v3761_v31  ;;  %3391 = vmatprep.subr.bf16.mxu0 %v3762_v40  ;;  %v3809_v31 = vld [vmem:[%s4926_s1 + $0x298] sm:$0xff]   ;;  %v3818_v40 = vld [vmem:[%s4926_s1 + $0x270] sm:$0xff]   ;;  %v3846_v12 = vld [vmem:[%s4926_s1 + $0x368] sm:$0xff]  }
  0x22   :  { %3413 = vmatprep.subr.bf16.mxu1 %v3763_v41  ;;  %v3819_v41 = vld [vmem:[%s4926_s1 + $0x2f0] sm:$0xff]   ;;  %v3847_v13 = vld [vmem:[%s4926_s1 + $0x3e8] sm:$0xff]  }
  0x23   :  { %2301 = vmatmul.mubr.bf16.vlgmr.msra.gmra.mrb[0].mxu0 %v3050_v35  ;;  %v3813_v35 = vld [vmem:[%s4926_s1 + $0x2a0] sm:$0xff]  }
  0x24   :  { %2342 = vmatmul.mubr.bf16.vlgmr.msra.gmra.mrb[0].mxu1 %v3052_v38  ;;  %3392 = vmatpush3.bf16.msra.mxu0 %v3764_v42  ;;  %v3816_v38 = vld [vmem:[%s4926_s1 + $0x228] sm:$0xff]   ;;  %v3820_v42 = vld [vmem:[%s4926_s1 + $0x230] sm:$0xff]  }
  0x25   :  { %3414 = vmatpush3.bf16.msra.mxu1 %v3765_v43  ;;  %3393 = vmatprep.subr.bf16.mxu0 %v3766_v44  ;;  %v3821_v43 = vld [vmem:[%s4926_s1 + $0x2b0] sm:$0xff]   ;;  %v3822_v44 = vld [vmem:[%s4926_s1 + $0x278] sm:$0xff]  }
  0x26   :  { %3415 = vmatprep.subr.bf16.mxu1 %v3767_v45  ;;  %2382 = vmatprep.mubr.bf16.mxu0 %v3055_v11  ;;  %v3823_v45 = vld [vmem:[%s4926_s1 + $0x2f8] sm:$0xff]   ;;  %v3845_v11 = vld [vmem:[%s4926_s1 + $0x3a0] sm:$0xff]  }
  0x27   :  { %2423 = vmatprep.mubr.bf16.mxu1 %v3057_v15  ;;  %v3849_v15 = vld [vmem:[%s4926_s1 + $0x3a8] sm:$0xff]  }
  0x28   :  { %3394 = vmatpush3.bf16.msra.mxu0 %v3768_v46  ;;  %v3824_v46 = vld [vmem:[%s4926_s1 + $0x238] sm:$0xff]  }
  0x29   :  { %3416 = vmatpush3.bf16.msra.mxu1 %v3769_v47  ;;  %3395 = vmatprep.subr.bf16.mxu0 %v3770_v48  ;;  %v3825_v47 = vld [vmem:[%s4926_s1 + $0x2b8] sm:$0xff]   ;;  %v25_v48 = vld [vmem:[%s4927_s0 + $0x20] sm:$0xff] }
  0x2a   :  { %3417 = vmatprep.subr.bf16.mxu1 %v3771_v49  ;;  %v41_v49 = vld [vmem:[%s4927_s0 + $0xa0] sm:$0xff] }
  0x2c   :  { %3396 = vmatpush3.bf16.msra.mxu0 %v3772_v50  ;;  %v26_v50 = vld [vmem:[%s4927_s0 + $0x28] sm:$0xff] }
  0x2d   :  { %3418 = vmatpush3.bf16.msra.mxu1 %v3773_v51  ;;  %3397 = vmatprep.subr.bf16.mxu0 %v3774_v52  ;;  %v42_v51 = vld [vmem:[%s4927_s0 + $0xa8] sm:$0xff]  ;;  %v3058_v52 = vcombine.low %v25_v48, %v41_v49 }
  0x2e   :  { %3419 = vmatprep.subr.bf16.mxu1 %v3775_v53  ;;  %v3059_v53 = vcombine.high %v25_v48, %v41_v49  ;;  %v3874_v48 = vld [vmem:[%s4926_s1 + $0x460] sm:$0xff]  }
  0x2f   :  { %v3875_v49 = vld [vmem:[%s4926_s1 + $0x4e0] sm:$0xff]  }
  0x30   :  { %3398 = vmatpush3.bf16.msra.mxu0 %v3776_v54  ;;  %v3060_v54 = vcombine.low %v26_v50, %v42_v51 }
  0x31   :  { %3420 = vmatpush3.bf16.msra.mxu1 %v3777_v55  ;;  %3399 = vmatprep.subr.bf16.mxu0 %v3778_v56  ;;  %v3061_v55 = vcombine.high %v26_v50, %v42_v51  ;;  %v3826_v56 = vld [vmem:[%s4926_s1 + $0x340] sm:$0xff]  }
  0x32   :  { %3421 = vmatprep.subr.bf16.mxu1 %v3779_v57  ;;  %v3827_v57 = vld [vmem:[%s4926_s1 + $0x3c0] sm:$0xff]  }
  0x33   :  { %v3876_v50 = vld [vmem:[%s4926_s1 + $0x420] sm:$0xff]  }
  0x34   :  { %3400 = vmatpush3.bf16.msra.mxu0 %v3780_v58  ;;  %v3828_v58 = vld [vmem:[%s4926_s1 + $0x300] sm:$0xff]  }
  0x35   :  { %3422 = vmatpush3.bf16.msra.mxu1 %v3781_v59  ;;  %3401 = vmatprep.subr.bf16.mxu0 %v3782_v60  ;;  %v3829_v59 = vld [vmem:[%s4926_s1 + $0x380] sm:$0xff]   ;;  %v3830_v60 = vld [vmem:[%s4926_s1 + $0x348] sm:$0xff]  }
  0x36   :  { %3423 = vmatprep.subr.bf16.mxu1 %v3783_v61  ;;  %v3831_v61 = vld [vmem:[%s4926_s1 + $0x3c8] sm:$0xff]   ;;  %v3877_v51 = vld [vmem:[%s4926_s1 + $0x4a0] sm:$0xff]  }
  0x38   :  { %3402 = vmatpush3.bf16.msra.mxu0 %v3784_v62  ;;  %v3832_v62 = vld [vmem:[%s4926_s1 + $0x308] sm:$0xff]  }
  0x39   :  { %3424 = vmatpush3.bf16.msra.mxu1 %v3785_v63  ;;  %3403 = vmatprep.subr.bf16.mxu0 %v3786_v0  ;;  %v3833_v63 = vld [vmem:[%s4926_s1 + $0x388] sm:$0xff]   ;;  %v3834_v0 = vld [vmem:[%s4926_s1 + $0x350] sm:$0xff]  }
  0x3a   :  { %3425 = vmatprep.subr.bf16.mxu1 %v3787_v1  ;;  %v3835_v1 = vld [vmem:[%s4926_s1 + $0x3d0] sm:$0xff]  }
  0x3c   :  { %3404 = vmatpush3.bf16.msra.mxu0 %v3788_v2  ;;  %v3836_v2 = vld [vmem:[%s4926_s1 + $0x310] sm:$0xff]  }
  0x3d   :  { %3426 = vmatpush3.bf16.msra.mxu1 %v3789_v3  ;;  %3405 = vmatprep.subr.bf16.mxu0 %v3790_v4  ;;  %v3837_v3 = vld [vmem:[%s4926_s1 + $0x390] sm:$0xff]   ;;  %v3838_v4 = vld [vmem:[%s4926_s1 + $0x358] sm:$0xff]  }
  0x3e   :  { %3427 = vmatprep.subr.bf16.mxu1 %v3791_v5  ;;  %v3839_v5 = vld [vmem:[%s4926_s1 + $0x3d8] sm:$0xff]  }
  0x40   :  { %3406 = vmatpush3.bf16.msra.mxu0 %v3792_v6  ;;  %v3840_v6 = vld [vmem:[%s4926_s1 + $0x318] sm:$0xff]  }
  0x41   :  { %3428 = vmatpush3.bf16.msra.mxu1 %v3793_v7  ;;  %3435 = vmatprep.subr.bf16.mxu0 %v3794_v16  ;;  %v3841_v7 = vld [vmem:[%s4926_s1 + $0x398] sm:$0xff]   ;;  %v3850_v16 = vld [vmem:[%s4926_s1 + $0x370] sm:$0xff]  }
  0x42   :  { %3457 = vmatprep.subr.bf16.mxu1 %v3795_v17  ;;  %v3851_v17 = vld [vmem:[%s4926_s1 + $0x3f0] sm:$0xff]  }
  0x43   :  { %2383 = vmatmul.mubr.bf16.vlgmr.msra.gmra.mrb[4].mxu0 %v3054_v10  ;;  %v3844_v10 = vld [vmem:[%s4926_s1 + $0x320] sm:$0xff]  }
  0x44   :  { %2424 = vmatmul.mubr.bf16.vlgmr.msra.gmra.mrb[4].mxu1 %v3056_v14  ;;  %3436 = vmatpush3.bf16.msra.mxu0 %v3796_v18  ;;  %v3848_v14 = vld [vmem:[%s4926_s1 + $0x328] sm:$0xff]   ;;  %v3852_v18 = vld [vmem:[%s4926_s1 + $0x330] sm:$0xff]  }
  0x45   :  { %3458 = vmatpush3.bf16.msra.mxu1 %v3797_v19  ;;  %3437 = vmatprep.subr.bf16.mxu0 %v3798_v20  ;;  %v3853_v19 = vld [vmem:[%s4926_s1 + $0x3b0] sm:$0xff]   ;;  %v3854_v20 = vld [vmem:[%s4926_s1 + $0x378] sm:$0xff]  }
  0x46   :  { %3459 = vmatprep.subr.bf16.mxu1 %v3799_v21  ;;  %2464 = vmatprep.mubr.bf16.mxu0 %v3059_v53  ;;  %v3855_v21 = vld [vmem:[%s4926_s1 + $0x3f8] sm:$0xff]   ;;  %v3879_v53 = vld [vmem:[%s4926_s1 + $0x4e8] sm:$0xff]  }
  0x47   :  { %2505 = vmatprep.mubr.bf16.mxu1 %v3061_v55  ;;  %v3881_v55 = vld [vmem:[%s4926_s1 + $0x4a8] sm:$0xff]  }
  0x48   :  { %3438 = vmatpush3.bf16.msra.mxu0 %v3800_v22  ;;  %v3856_v22 = vld [vmem:[%s4926_s1 + $0x338] sm:$0xff]  }
  0x49   :  { %3460 = vmatpush3.bf16.msra.mxu1 %v3801_v23  ;;  %3439 = vmatprep.subr.bf16.mxu0 %v3802_v24  ;;  %v3857_v23 = vld [vmem:[%s4926_s1 + $0x3b8] sm:$0xff]   ;;  %v27_v24 = vld [vmem:[%s4927_s0 + $0x30] sm:$0xff] }
  0x4a   :  { %3461 = vmatprep.subr.bf16.mxu1 %v3803_v25  ;;  %v43_v25 = vld [vmem:[%s4927_s0 + $0xb0] sm:$0xff] }
  0x4c   :  { %3440 = vmatpush3.bf16.msra.mxu0 %v3804_v26  ;;  %v28_v26 = vld [vmem:[%s4927_s0 + $0x38] sm:$0xff] }
  0x4d   :  { %3462 = vmatpush3.bf16.msra.mxu1 %v3805_v27  ;;  %3441 = vmatprep.subr.bf16.mxu0 %v3806_v28  ;;  %v3062_v27 = vcombine.low %v27_v24, %v43_v25  ;;  %v3063_v28 = vcombine.high %v27_v24, %v43_v25  ;;  %v3906_v24 = vld [vmem:[%s4926_s1 + $0x560] sm:$0xff]  }
  0x4e   :  { %3463 = vmatprep.subr.bf16.mxu1 %v3807_v29  ;;  %v44_v29 = vld [vmem:[%s4927_s0 + $0xb8] sm:$0xff]  ;;  %v3907_v25 = vld [vmem:[%s4926_s1 + $0x5e0] sm:$0xff]  }
  0x50   :  { %3442 = vmatpush3.bf16.msra.mxu0 %v3808_v30  ;;  %v3064_v30 = vcombine.low %v28_v26, %v44_v29 }
  0x51   :  { %3464 = vmatpush3.bf16.msra.mxu1 %v3809_v31  ;;  %3443 = vmatprep.subr.bf16.mxu0 %v3810_v32  ;;  %v3065_v31 = vcombine.high %v28_v26, %v44_v29  ;;  %v3858_v32 = vld [vmem:[%s4926_s1 + $0x440] sm:$0xff]   ;;  %v3911_v29 = vld [vmem:[%s4926_s1 + $0x5e8] sm:$0xff]  }
  0x52   :  { %3465 = vmatprep.subr.bf16.mxu1 %v3811_v33  ;;  %v3859_v33 = vld [vmem:[%s4926_s1 + $0x4c0] sm:$0xff]  }
  0x53   :  { %v3908_v26 = vld [vmem:[%s4926_s1 + $0x520] sm:$0xff]  }
  0x54   :  { %3444 = vmatpush3.bf16.msra.mxu0 %v3812_v34  ;;  %v3860_v34 = vld [vmem:[%s4926_s1 + $0x400] sm:$0xff]  }
  0x55   :  { %3466 = vmatpush3.bf16.msra.mxu1 %v3813_v35  ;;  %3445 = vmatprep.subr.bf16.mxu0 %v3814_v36  ;;  %v3861_v35 = vld [vmem:[%s4926_s1 + $0x480] sm:$0xff]   ;;  %v3862_v36 = vld [vmem:[%s4926_s1 + $0x448] sm:$0xff]  }
  0x56   :  { %3467 = vmatprep.subr.bf16.mxu1 %v3815_v37  ;;  %v3863_v37 = vld [vmem:[%s4926_s1 + $0x4c8] sm:$0xff]  }
  0x58   :  { %3446 = vmatpush3.bf16.msra.mxu0 %v3816_v38  ;;  %v3864_v38 = vld [vmem:[%s4926_s1 + $0x408] sm:$0xff]  }
  0x59   :  { %3468 = vmatpush3.bf16.msra.mxu1 %v3817_v39  ;;  %3447 = vmatprep.subr.bf16.mxu0 %v3818_v40  ;;  %v3865_v39 = vld [vmem:[%s4926_s1 + $0x488] sm:$0xff]   ;;  %v3866_v40 = vld [vmem:[%s4926_s1 + $0x450] sm:$0xff]  }
  0x5a   :  { %3469 = vmatprep.subr.bf16.mxu1 %v3819_v41  ;;  %v3867_v41 = vld [vmem:[%s4926_s1 + $0x4d0] sm:$0xff]  }
  0x5c   :  { %3448 = vmatpush3.bf16.msra.mxu0 %v3820_v42  ;;  %v3868_v42 = vld [vmem:[%s4926_s1 + $0x410] sm:$0xff]  }
  0x5d   :  { %3470 = vmatpush3.bf16.msra.mxu1 %v3821_v43  ;;  %3449 = vmatprep.subr.bf16.mxu0 %v3822_v44  ;;  %v3869_v43 = vld [vmem:[%s4926_s1 + $0x490] sm:$0xff]   ;;  %v3870_v44 = vld [vmem:[%s4926_s1 + $0x458] sm:$0xff]  }
  0x5e   :  { %3471 = vmatprep.subr.bf16.mxu1 %v3823_v45  ;;  %v3871_v45 = vld [vmem:[%s4926_s1 + $0x4d8] sm:$0xff]  }
  0x60   :  { %3450 = vmatpush3.bf16.msra.mxu0 %v3824_v46  ;;  %v3872_v46 = vld [vmem:[%s4926_s1 + $0x418] sm:$0xff]  }
  0x61   :  { %3472 = vmatpush3.bf16.msra.mxu1 %v3825_v47  ;;  %3479 = vmatprep.subr.bf16.mxu0 %v3826_v56  ;;  %v3873_v47 = vld [vmem:[%s4926_s1 + $0x498] sm:$0xff]   ;;  %v3882_v56 = vld [vmem:[%s4926_s1 + $0x470] sm:$0xff]  }
  0x62   :  { %3501 = vmatprep.subr.bf16.mxu1 %v3827_v57  ;;  %v3883_v57 = vld [vmem:[%s4926_s1 + $0x4f0] sm:$0xff]  }
  0x63   :  { %2465 = vmatmul.mubr.bf16.vlgmr.msra.gmra.mrb[8].mxu0 %v3058_v52  ;;  %v3878_v52 = vld [vmem:[%s4926_s1 + $0x468] sm:$0xff]  }
  0x64   :  { %2506 = vmatmul.mubr.bf16.vlgmr.msra.gmra.mrb[8].mxu1 %v3060_v54  ;;  %3480 = vmatpush3.bf16.msra.mxu0 %v3828_v58  ;;  %v3880_v54 = vld [vmem:[%s4926_s1 + $0x428] sm:$0xff]   ;;  %v3884_v58 = vld [vmem:[%s4926_s1 + $0x430] sm:$0xff]  }
  0x65   :  { %3502 = vmatpush3.bf16.msra.mxu1 %v3829_v59  ;;  %3481 = vmatprep.subr.bf16.mxu0 %v3830_v60  ;;  %v3885_v59 = vld [vmem:[%s4926_s1 + $0x4b0] sm:$0xff]   ;;  %v3886_v60 = vld [vmem:[%s4926_s1 + $0x478] sm:$0xff]  }
  0x66   :  { %3503 = vmatprep.subr.bf16.mxu1 %v3831_v61  ;;  %2546 = vmatprep.mubr.bf16.mxu0 %v3063_v28  ;;  %v3887_v61 = vld [vmem:[%s4926_s1 + $0x4f8] sm:$0xff]   ;;  %v3910_v28 = vld [vmem:[%s4926_s1 + $0x568] sm:$0xff]  }
  0x67   :  { %2587 = vmatprep.mubr.bf16.mxu1 %v3065_v31  ;;  %v3913_v31 = vld [vmem:[%s4926_s1 + $0x5a8] sm:$0xff]  }
  0x68   :  { %3482 = vmatpush3.bf16.msra.mxu0 %v3832_v62  ;;  %v3888_v62 = vld [vmem:[%s4926_s1 + $0x438] sm:$0xff]  }
  0x69   :  { %3504 = vmatpush3.bf16.msra.mxu1 %v3833_v63  ;;  %3483 = vmatprep.subr.bf16.mxu0 %v3834_v0  ;;  %v3889_v63 = vld [vmem:[%s4926_s1 + $0x4b8] sm:$0xff]   ;;  %v29_v0 = vld [vmem:[%s4927_s0 + $0x40] sm:$0xff] }
  0x6a   :  { %3505 = vmatprep.subr.bf16.mxu1 %v3835_v1  ;;  %v45_v1 = vld [vmem:[%s4927_s0 + $0xc0] sm:$0xff] }
  0x6c   :  { %3484 = vmatpush3.bf16.msra.mxu0 %v3836_v2  ;;  %v3066_v2 = vcombine.low %v29_v0, %v45_v1 }
  0x6d   :  { %3506 = vmatpush3.bf16.msra.mxu1 %v3837_v3  ;;  %3485 = vmatprep.subr.bf16.mxu0 %v3838_v4  ;;  %v3067_v3 = vcombine.high %v29_v0, %v45_v1  ;;  %v30_v4 = vld [vmem:[%s4927_s0 + $0x48] sm:$0xff]  ;;  %v3938_v0 = vld [vmem:[%s4926_s1 + $0x660] sm:$0xff]  }
  0x6e   :  { %3507 = vmatprep.subr.bf16.mxu1 %v3839_v5  ;;  %v46_v5 = vld [vmem:[%s4927_s0 + $0xc8] sm:$0xff]  ;;  %v3939_v1 = vld [vmem:[%s4926_s1 + $0x6e0] sm:$0xff]  }
  0x70   :  { %3486 = vmatpush3.bf16.msra.mxu0 %v3840_v6  ;;  %v3068_v6 = vcombine.low %v30_v4, %v46_v5 }
  0x71   :  { %3508 = vmatpush3.bf16.msra.mxu1 %v3841_v7  ;;  %3487 = vmatprep.subr.bf16.mxu0 %v3842_v8  ;;  %v3069_v7 = vcombine.high %v30_v4, %v46_v5  ;;  %v3890_v8 = vld [vmem:[%s4926_s1 + $0x540] sm:$0xff]   ;;  %v3942_v4 = vld [vmem:[%s4926_s1 + $0x668] sm:$0xff]  }
  0x72   :  { %3509 = vmatprep.subr.bf16.mxu1 %v3843_v9  ;;  %v3891_v9 = vld [vmem:[%s4926_s1 + $0x5c0] sm:$0xff]   ;;  %v3943_v5 = vld [vmem:[%s4926_s1 + $0x6e8] sm:$0xff]  }
  0x74   :  { %3488 = vmatpush3.bf16.msra.mxu0 %v3844_v10  ;;  %v3892_v10 = vld [vmem:[%s4926_s1 + $0x500] sm:$0xff]  }
  0x75   :  { %3510 = vmatpush3.bf16.msra.mxu1 %v3845_v11  ;;  %3489 = vmatprep.subr.bf16.mxu0 %v3846_v12  ;;  %v3893_v11 = vld [vmem:[%s4926_s1 + $0x580] sm:$0xff]   ;;  %v3894_v12 = vld [vmem:[%s4926_s1 + $0x548] sm:$0xff]  }
  0x76   :  { %3511 = vmatprep.subr.bf16.mxu1 %v3847_v13  ;;  %v3895_v13 = vld [vmem:[%s4926_s1 + $0x5c8] sm:$0xff]  }
  0x78   :  { %3490 = vmatpush3.bf16.msra.mxu0 %v3848_v14  ;;  %v3896_v14 = vld [vmem:[%s4926_s1 + $0x508] sm:$0xff]  }
  0x79   :  { %3512 = vmatpush3.bf16.msra.mxu1 %v3849_v15  ;;  %3491 = vmatprep.subr.bf16.mxu0 %v3850_v16  ;;  %v3897_v15 = vld [vmem:[%s4926_s1 + $0x588] sm:$0xff]   ;;  %v3898_v16 = vld [vmem:[%s4926_s1 + $0x550] sm:$0xff]  }
  0x7a   :  { %3513 = vmatprep.subr.bf16.mxu1 %v3851_v17  ;;  %v3899_v17 = vld [vmem:[%s4926_s1 + $0x5d0] sm:$0xff]  }
  0x7c   :  { %3492 = vmatpush3.bf16.msra.mxu0 %v3852_v18  ;;  %v3900_v18 = vld [vmem:[%s4926_s1 + $0x510] sm:$0xff]  }
  0x7d   :  { %3514 = vmatpush3.bf16.msra.mxu1 %v3853_v19  ;;  %3493 = vmatprep.subr.bf16.mxu0 %v3854_v20  ;;  %v3901_v19 = vld [vmem:[%s4926_s1 + $0x590] sm:$0xff]   ;;  %v3902_v20 = vld [vmem:[%s4926_s1 + $0x558] sm:$0xff]  }
  0x7e   :  { %3515 = vmatprep.subr.bf16.mxu1 %v3855_v21  ;;  %v3903_v21 = vld [vmem:[%s4926_s1 + $0x5d8] sm:$0xff]  }
  0x80   :  { %3494 = vmatpush3.bf16.msra.mxu0 %v3856_v22  ;;  %v3904_v22 = vld [vmem:[%s4926_s1 + $0x518] sm:$0xff]  }
  0x81   :  { %3516 = vmatpush3.bf16.msra.mxu1 %v3857_v23  ;;  %3523 = vmatprep.subr.bf16.mxu0 %v3858_v32  ;;  %v3905_v23 = vld [vmem:[%s4926_s1 + $0x598] sm:$0xff]   ;;  %v3914_v32 = vld [vmem:[%s4926_s1 + $0x570] sm:$0xff]  }
  0x82   :  { %3545 = vmatprep.subr.bf16.mxu1 %v3859_v33  ;;  %v3915_v33 = vld [vmem:[%s4926_s1 + $0x5f0] sm:$0xff]  }
  0x83   :  { %2547 = vmatmul.mubr.bf16.vlgmr.msra.gmra.mrb[12].mxu0 %v3062_v27  ;;  %v3909_v27 = vld [vmem:[%s4926_s1 + $0x5a0] sm:$0xff]  }
  0x84   :  { %2588 = vmatmul.mubr.bf16.vlgmr.msra.gmra.mrb[12].mxu1 %v3064_v30  ;;  %3524 = vmatpush3.bf16.msra.mxu0 %v3860_v34  ;;  %v3912_v30 = vld [vmem:[%s4926_s1 + $0x528] sm:$0xff]   ;;  %v3916_v34 = vld [vmem:[%s4926_s1 + $0x530] sm:$0xff]  }
  0x85   :  { %3546 = vmatpush3.bf16.msra.mxu1 %v3861_v35  ;;  %3525 = vmatprep.subr.bf16.mxu0 %v3862_v36  ;;  %v3917_v35 = vld [vmem:[%s4926_s1 + $0x5b0] sm:$0xff]   ;;  %v3918_v36 = vld [vmem:[%s4926_s1 + $0x578] sm:$0xff]  }
  0x86   :  { %3547 = vmatprep.subr.bf16.mxu1 %v3863_v37  ;;  %2628 = vmatprep.mubr.bf16.mxu0 %v3067_v3  ;;  %v3919_v37 = vld [vmem:[%s4926_s1 + $0x5f8] sm:$0xff]   ;;  %v3941_v3 = vld [vmem:[%s4926_s1 + $0x6a0] sm:$0xff]  }
  0x87   :  { %2669 = vmatprep.mubr.bf16.mxu1 %v3069_v7  ;;  %v3945_v7 = vld [vmem:[%s4926_s1 + $0x6a8] sm:$0xff]  }
  0x88   :  { %3526 = vmatpush3.bf16.msra.mxu0 %v3864_v38  ;;  %v3920_v38 = vld [vmem:[%s4926_s1 + $0x538] sm:$0xff]  }
  0x89   :  { %3548 = vmatpush3.bf16.msra.mxu1 %v3865_v39  ;;  %3527 = vmatprep.subr.bf16.mxu0 %v3866_v40  ;;  %v3921_v39 = vld [vmem:[%s4926_s1 + $0x5b8] sm:$0xff]   ;;  %v31_v40 = vld [vmem:[%s4927_s0 + $0x50] sm:$0xff] }
  0x8a   :  { %3549 = vmatprep.subr.bf16.mxu1 %v3867_v41  ;;  %v47_v41 = vld [vmem:[%s4927_s0 + $0xd0] sm:$0xff] }
  0x8c   :  { %3528 = vmatpush3.bf16.msra.mxu0 %v3868_v42  ;;  %v32_v42 = vld [vmem:[%s4927_s0 + $0x58] sm:$0xff] }
  0x8d   :  { %3550 = vmatpush3.bf16.msra.mxu1 %v3869_v43  ;;  %3529 = vmatprep.subr.bf16.mxu0 %v3870_v44  ;;  %v48_v43 = vld [vmem:[%s4927_s0 + $0xd8] sm:$0xff]  ;;  %v3070_v44 = vcombine.low %v31_v40, %v47_v41 }
  0x8e   :  { %3551 = vmatprep.subr.bf16.mxu1 %v3871_v45  ;;  %v3071_v45 = vcombine.high %v31_v40, %v47_v41  ;;  %v3969_v41 = vld [vmem:[%s4926_s1 + $0x798] sm:$0xff]  }
  0x90   :  { %3530 = vmatpush3.bf16.msra.mxu0 %v3872_v46  ;;  %v3072_v46 = vcombine.low %v32_v42, %v48_v43 }
  0x91   :  { %3552 = vmatpush3.bf16.msra.mxu1 %v3873_v47  ;;  %3531 = vmatprep.subr.bf16.mxu0 %v3874_v48  ;;  %v3073_v47 = vcombine.high %v32_v42, %v48_v43  ;;  %v3922_v48 = vld [vmem:[%s4926_s1 + $0x640] sm:$0xff]  }
  0x92   :  { %3553 = vmatprep.subr.bf16.mxu1 %v3875_v49  ;;  %v3923_v49 = vld [vmem:[%s4926_s1 + $0x6c0] sm:$0xff]  }
  0x93   :  { %v3970_v43 = vld [vmem:[%s4926_s1 + $0x760] sm:$0xff]  }
  0x94   :  { %3532 = vmatpush3.bf16.msra.mxu0 %v3876_v50  ;;  %v3924_v50 = vld [vmem:[%s4926_s1 + $0x600] sm:$0xff]  }
  0x95   :  { %3554 = vmatpush3.bf16.msra.mxu1 %v3877_v51  ;;  %3533 = vmatprep.subr.bf16.mxu0 %v3878_v52  ;;  %v3925_v51 = vld [vmem:[%s4926_s1 + $0x680] sm:$0xff]   ;;  %v3926_v52 = vld [vmem:[%s4926_s1 + $0x648] sm:$0xff]  }
  0x96   :  { %3555 = vmatprep.subr.bf16.mxu1 %v3879_v53  ;;  %v3927_v53 = vld [vmem:[%s4926_s1 + $0x6c8] sm:$0xff]  }
  0x98   :  { %3534 = vmatpush3.bf16.msra.mxu0 %v3880_v54  ;;  %v3928_v54 = vld [vmem:[%s4926_s1 + $0x608] sm:$0xff]  }
  0x99   :  { %3556 = vmatpush3.bf16.msra.mxu1 %v3881_v55  ;;  %3535 = vmatprep.subr.bf16.mxu0 %v3882_v56  ;;  %v3929_v55 = vld [vmem:[%s4926_s1 + $0x688] sm:$0xff]   ;;  %v3930_v56 = vld [vmem:[%s4926_s1 + $0x650] sm:$0xff]  }
  0x9a   :  { %3557 = vmatprep.subr.bf16.mxu1 %v3883_v57  ;;  %v3931_v57 = vld [vmem:[%s4926_s1 + $0x6d0] sm:$0xff]  }
  0x9c   :  { %3536 = vmatpush3.bf16.msra.mxu0 %v3884_v58  ;;  %v3932_v58 = vld [vmem:[%s4926_s1 + $0x610] sm:$0xff]  }
  0x9d   :  { %3558 = vmatpush3.bf16.msra.mxu1 %v3885_v59  ;;  %3537 = vmatprep.subr.bf16.mxu0 %v3886_v60  ;;  %v3933_v59 = vld [vmem:[%s4926_s1 + $0x690] sm:$0xff]   ;;  %v3934_v60 = vld [vmem:[%s4926_s1 + $0x658] sm:$0xff]  }
  0x9e   :  { %3559 = vmatprep.subr.bf16.mxu1 %v3887_v61  ;;  %v3935_v61 = vld [vmem:[%s4926_s1 + $0x6d8] sm:$0xff]  }
  0xa0   :  { %3538 = vmatpush3.bf16.msra.mxu0 %v3888_v62  ;;  %v3936_v62 = vld [vmem:[%s4926_s1 + $0x618] sm:$0xff]  }
  0xa1   :  { %3560 = vmatpush3.bf16.msra.mxu1 %v3889_v63  ;;  %3567 = vmatprep.subr.bf16.mxu0 %v3890_v8  ;;  %v3937_v63 = vld [vmem:[%s4926_s1 + $0x698] sm:$0xff]   ;;  %v3946_v8 = vld [vmem:[%s4926_s1 + $0x670] sm:$0xff]  }
  0xa2   :  { %3589 = vmatprep.subr.bf16.mxu1 %v3891_v9  ;;  %v3947_v9 = vld [vmem:[%s4926_s1 + $0x6f0] sm:$0xff]  }
  0xa3   :  { %2629 = vmatmul.mubr.bf16.vlgmr.msra.gmra.mrb[16].mxu0 %v3066_v2  ;;  %v3940_v2 = vld [vmem:[%s4926_s1 + $0x620] sm:$0xff]  }
  0xa4   :  { %2670 = vmatmul.mubr.bf16.vlgmr.msra.gmra.mrb[16].mxu1 %v3068_v6  ;;  %3568 = vmatpush3.bf16.msra.mxu0 %v3892_v10  ;;  %v3944_v6 = vld [vmem:[%s4926_s1 + $0x628] sm:$0xff]   ;;  %v3948_v10 = vld [vmem:[%s4926_s1 + $0x630] sm:$0xff]  }
  0xa5   :  { %3590 = vmatpush3.bf16.msra.mxu1 %v3893_v11  ;;  %3569 = vmatprep.subr.bf16.mxu0 %v3894_v12  ;;  %v3949_v11 = vld [vmem:[%s4926_s1 + $0x6b0] sm:$0xff]   ;;  %v3950_v12 = vld [vmem:[%s4926_s1 + $0x678] sm:$0xff]  }
  0xa6   :  { %3591 = vmatprep.subr.bf16.mxu1 %v3895_v13  ;;  %2710 = vmatprep.mubr.bf16.mxu0 %v3071_v45  ;;  %v3951_v13 = vld [vmem:[%s4926_s1 + $0x6f8] sm:$0xff]  }
  0xa7   :  { %2751 = vmatprep.mubr.bf16.mxu1 %v3073_v47 }
  0xa8   :  { %3570 = vmatpush3.bf16.msra.mxu0 %v3896_v14  ;;  %v3952_v14 = vld [vmem:[%s4926_s1 + $0x638] sm:$0xff]  }
  0xa9   :  { %3592 = vmatpush3.bf16.msra.mxu1 %v3897_v15  ;;  %3571 = vmatprep.subr.bf16.mxu0 %v3898_v16  ;;  %v3953_v15 = vld [vmem:[%s4926_s1 + $0x6b8] sm:$0xff]   ;;  %v33_v16 = vld [vmem:[%s4927_s0 + $0x60] sm:$0xff] }
  0xaa   :  { %3593 = vmatprep.subr.bf16.mxu1 %v3899_v17  ;;  %v49_v17 = vld [vmem:[%s4927_s0 + $0xe0] sm:$0xff] }
  0xac   :  { %3572 = vmatpush3.bf16.msra.mxu0 %v3900_v18  ;;  %v34_v18 = vld [vmem:[%s4927_s0 + $0x68] sm:$0xff] }
  0xad   :  { %3594 = vmatpush3.bf16.msra.mxu1 %v3901_v19  ;;  %3573 = vmatprep.subr.bf16.mxu0 %v3902_v20  ;;  %v3074_v19 = vcombine.low %v33_v16, %v49_v17  ;;  %v3075_v20 = vcombine.high %v33_v16, %v49_v17 }
  0xae   :  { %3595 = vmatprep.subr.bf16.mxu1 %v3903_v21  ;;  %v50_v21 = vld [vmem:[%s4927_s0 + $0xe8] sm:$0xff] }
  0xb0   :  { %3574 = vmatpush3.bf16.msra.mxu0 %v3904_v22  ;;  %v3076_v22 = vcombine.low %v34_v18, %v50_v21 }
  0xb1   :  { %3596 = vmatpush3.bf16.msra.mxu1 %v3905_v23  ;;  %3575 = vmatprep.subr.bf16.mxu0 %v3906_v24  ;;  %v3077_v23 = vcombine.high %v34_v18, %v50_v21  ;;  %v3954_v24 = vld [vmem:[%s4926_s1 + $0x740] sm:$0xff]  }
  0xb2   :  { %3597 = vmatprep.subr.bf16.mxu1 %v3907_v25  ;;  %v3955_v25 = vld [vmem:[%s4926_s1 + $0x7c0] sm:$0xff]  }
  0xb4   :  { %3576 = vmatpush3.bf16.msra.mxu0 %v3908_v26  ;;  %v3956_v26 = vld [vmem:[%s4926_s1 + $0x700] sm:$0xff]  }
  0xb5   :  { %3598 = vmatpush3.bf16.msra.mxu1 %v3909_v27  ;;  %3577 = vmatprep.subr.bf16.mxu0 %v3910_v28  ;;  %v3957_v27 = vld [vmem:[%s4926_s1 + $0x780] sm:$0xff]   ;;  %v3958_v28 = vld [vmem:[%s4926_s1 + $0x748] sm:$0xff]  }
  0xb6   :  { %3599 = vmatprep.subr.bf16.mxu1 %v3911_v29  ;;  %v3959_v29 = vld [vmem:[%s4926_s1 + $0x7c8] sm:$0xff]  }
  0xb8   :  { %3578 = vmatpush3.bf16.msra.mxu0 %v3912_v30  ;;  %v3960_v30 = vld [vmem:[%s4926_s1 + $0x708] sm:$0xff]  }
  0xb9   :  { %3600 = vmatpush3.bf16.msra.mxu1 %v3913_v31  ;;  %3579 = vmatprep.subr.bf16.mxu0 %v3914_v32  ;;  %v3961_v31 = vld [vmem:[%s4926_s1 + $0x788] sm:$0xff]   ;;  %v3962_v32 = vld [vmem:[%s4926_s1 + $0x750] sm:$0xff]  }
  0xba   :  { %3601 = vmatprep.subr.bf16.mxu1 %v3915_v33  ;;  %v3963_v33 = vld [vmem:[%s4926_s1 + $0x7d0] sm:$0xff]  }
  0xbc   :  { %3580 = vmatpush3.bf16.msra.mxu0 %v3916_v34  ;;  %v3964_v34 = vld [vmem:[%s4926_s1 + $0x710] sm:$0xff]  }
  0xbd   :  { %3602 = vmatpush3.bf16.msra.mxu1 %v3917_v35  ;;  %3581 = vmatprep.subr.bf16.mxu0 %v3918_v36  ;;  %v3965_v35 = vld [vmem:[%s4926_s1 + $0x790] sm:$0xff]   ;;  %v3966_v36 = vld [vmem:[%s4926_s1 + $0x758] sm:$0xff]  }
  0xbe   :  { %3603 = vmatprep.subr.bf16.mxu1 %v3919_v37  ;;  %v3967_v37 = vld [vmem:[%s4926_s1 + $0x7d8] sm:$0xff]  }
  0xc0   :  { %3582 = vmatpush3.bf16.msra.mxu0 %v3920_v38 }
  0xc1   :  { %3604 = vmatpush3.bf16.msra.mxu1 %v3921_v39  ;;  %3611 = vmatprep.subr.bf16.mxu0 %v3922_v48  ;;  %v3968_v39 = vld [vmem:[%s4926_s1 + $0x718] sm:$0xff]  }
  0xc2   :  { %3633 = vmatprep.subr.bf16.mxu1 %v3923_v49  ;;  %v3972_v49 = vld [vmem:[%s4926_s1 + $0x720] sm:$0xff]  }
  0xc3   :  { %2711 = vmatmul.mubr.bf16.vlgmr.msra.gmra.mrb[20].mxu0 %v3070_v44 }
  0xc4   :  { %2752 = vmatmul.mubr.bf16.vlgmr.msra.gmra.mrb[20].mxu1 %v3072_v46  ;;  %3612 = vmatpush3.bf16.msra.mxu0 %v3924_v50  ;;  %v3971_v46 = vld [vmem:[%s4926_s1 + $0x7e0] sm:$0xff]  }
  0xc5   :  { %3634 = vmatpush3.bf16.msra.mxu1 %v3925_v51  ;;  %3613 = vmatprep.subr.bf16.mxu0 %v3926_v52  ;;  %v3973_v51 = vld [vmem:[%s4926_s1 + $0x7a0] sm:$0xff]  }
  0xc6   :  { %3635 = vmatprep.subr.bf16.mxu1 %v3927_v53  ;;  %2792 = vmatprep.mubr.bf16.mxu0 %v3075_v20  ;;  %v3049_v52 = vld [vmem:[%s4928_s2] ss:$0 sm:$0xff] }
  0xc7   :  { %2833 = vmatprep.mubr.bf16.mxu1 %v3077_v23 }
  0xc8   :  { %3614 = vmatpush3.bf16.msra.mxu0 %v3928_v54 }
  0xc9   :  { %3636 = vmatpush3.bf16.msra.mxu1 %v3929_v55  ;;  %3615 = vmatprep.subr.bf16.mxu0 %v3930_v56  ;;  %v3974_v55 = vld [vmem:[%s4926_s1 + $0x768] sm:$0xff]  }
  0xca   :  { %3637 = vmatprep.subr.bf16.mxu1 %v3931_v57 }
  0xcc   :  { %3616 = vmatpush3.bf16.msra.mxu0 %v3932_v58  ;;  %v3975_v58 = vld [vmem:[%s4926_s1 + $0x7e8] sm:$0xff]  }
  0xcd   :  { %3638 = vmatpush3.bf16.msra.mxu1 %v3933_v59  ;;  %3617 = vmatprep.subr.bf16.mxu0 %v3934_v60 }
  0xce   :  { %3639 = vmatprep.subr.bf16.mxu1 %v3935_v61  ;;  %v3976_v61 = vld [vmem:[%s4926_s1 + $0x728] sm:$0xff]  }
  0xd0   :  { %3618 = vmatpush3.bf16.msra.mxu0 %v3936_v62 }
  0xd1   :  { %3640 = vmatpush3.bf16.msra.mxu1 %v3937_v63  ;;  %3619 = vmatprep.subr.bf16.mxu0 %v3938_v0  ;;  %v3977_v63 = vld [vmem:[%s4926_s1 + $0x7a8] sm:$0xff]  }
  0xd2   :  { %3641 = vmatprep.subr.bf16.mxu1 %v3939_v1  ;;  %v3978_v1 = vld [vmem:[%s4926_s1 + $0x770] sm:$0xff]  }
  0xd4   :  { %3620 = vmatpush3.bf16.msra.mxu0 %v3940_v2  ;;  %v3979_v2 = vld [vmem:[%s4926_s1 + $0x7f0] sm:$0xff]  }
  0xd5   :  { %3642 = vmatpush3.bf16.msra.mxu1 %v3941_v3  ;;  %3621 = vmatprep.subr.bf16.mxu0 %v3942_v4  ;;  %v3980_v3 = vld [vmem:[%s4926_s1 + $0x730] sm:$0xff]  }
  0xd6   :  { %3643 = vmatprep.subr.bf16.mxu1 %v3943_v5  ;;  %v3981_v4 = vld [vmem:[%s4926_s1 + $0x7b0] sm:$0xff]   ;;  %v3982_v5 = vld [vmem:[%s4926_s1 + $0x778] sm:$0xff]  }
  0xd8   :  { %3622 = vmatpush3.bf16.msra.mxu0 %v3944_v6  ;;  %v3983_v6 = vld [vmem:[%s4926_s1 + $0x7f8] sm:$0xff]  }
  0xd9   :  { %3644 = vmatpush3.bf16.msra.mxu1 %v3945_v7  ;;  %3623 = vmatprep.subr.bf16.mxu0 %v3946_v8  ;;  %v3984_v7 = vld [vmem:[%s4926_s1 + $0x738] sm:$0xff]  }
  0xda   :  { %3645 = vmatprep.subr.bf16.mxu1 %v3947_v9  ;;  %v3985_v8 = vld [vmem:[%s4926_s1 + $0x7b8] sm:$0xff]   ;;  %v35_v9 = vld [vmem:[%s4927_s0 + $0x70] sm:$0xff] }
  0xdc   :  { %3624 = vmatpush3.bf16.msra.mxu0 %v3948_v10  ;;  %v51_v10 = vld [vmem:[%s4927_s0 + $0xf0] sm:$0xff] }
  0xdd   :  { %3646 = vmatpush3.bf16.msra.mxu1 %v3949_v11  ;;  %3625 = vmatprep.subr.bf16.mxu0 %v3950_v12  ;;  %v36_v11 = vld [vmem:[%s4927_s0 + $0x78] sm:$0xff] }
  0xde   :  { %3647 = vmatprep.subr.bf16.mxu1 %v3951_v13  ;;  %v52_v12 = vld [vmem:[%s4927_s0 + $0xf8] sm:$0xff]  ;;  %v3078_v13 = vcombine.low %v35_v9, %v51_v10 }
  0xdf   :  { %v3081_v16 = vcombine.high %v36_v11, %v52_v12 }
  0xe0   :  { %3626 = vmatpush3.bf16.msra.mxu0 %v3952_v14  ;;  %v3079_v14 = vcombine.high %v35_v9, %v51_v10  ;;  %v3993_v9 = vld [vmem:[%s4929_s3 + $0x38] sm:$0xff]  }
  0xe1   :  { %3648 = vmatpush3.bf16.msra.mxu1 %v3953_v15  ;;  %3655 = vmatprep.subr.bf16.mxu0 %v3954_v24  ;;  %v3080_v15 = vcombine.low %v36_v11, %v52_v12 }
  0xe2   :  { %3677 = vmatprep.subr.bf16.mxu1 %v3955_v25 }
  0xe3   :  { %2793 = vmatmul.mubr.bf16.vlgmr.msra.gmra.mrb[24].mxu0 %v3074_v19 }
  0xe4   :  { %2834 = vmatmul.mubr.bf16.vlgmr.msra.gmra.mrb[24].mxu1 %v3076_v22  ;;  %3656 = vmatpush3.bf16.msra.mxu0 %v3956_v26 }
  0xe5   :  { %3678 = vmatpush3.bf16.msra.mxu1 %v3957_v27  ;;  %3657 = vmatprep.subr.bf16.mxu0 %v3958_v28 }
  0xe6   :  { %3679 = vmatprep.subr.bf16.mxu1 %v3959_v29  ;;  %2874 = vmatprep.mubr.bf16.mxu0 %v3079_v14 }
  0xe7   :  { %2915 = vmatprep.mubr.bf16.mxu1 %v3081_v16 }
  0xe8   :  { %3658 = vmatpush3.bf16.msra.mxu0 %v3960_v30 }
  0xe9   :  { %3680 = vmatpush3.bf16.msra.mxu1 %v3961_v31  ;;  %3659 = vmatprep.subr.bf16.mxu0 %v3962_v32 }
  0xea   :  { %3681 = vmatprep.subr.bf16.mxu1 %v3963_v33 }
  0xec   :  { %3660 = vmatpush3.bf16.msra.mxu0 %v3964_v34 }
  0xed   :  { %3682 = vmatpush3.bf16.msra.mxu1 %v3965_v35  ;;  %3661 = vmatprep.subr.bf16.mxu0 %v3966_v36 }
  0xee   :  { %3683 = vmatprep.subr.bf16.mxu1 %v3967_v37 }
  0xf0   :  { %3662 = vmatpush3.bf16.msra.mxu0 %v3968_v39 }
  0xf1   :  { %3684 = vmatpush3.bf16.msra.mxu1 %v3969_v41  ;;  %3663 = vmatprep.subr.bf16.mxu0 %v3970_v43 }
  0xf2   :  { %3685 = vmatprep.subr.bf16.mxu1 %v3971_v46 }
  0xf4   :  { %3664 = vmatpush3.bf16.msra.mxu0 %v3972_v49  ;;  %v3994_v49 = vmov 0.0  }
  0xf5   :  { %3686 = vmatpush3.bf16.msra.mxu1 %v3973_v51  ;;  %3665 = vmatprep.subr.bf16.mxu0 %v3974_v55  ;;  %v3987_v51 = vld [vmem:[%s4929_s3 + $0x8] sm:$0xff]  }
  0xf6   :  { %v3363_v38 = vpop.f32.mrb[0].mxu0  ;;  %3687 = vmatprep.subr.bf16.mxu1 %v3975_v58 }
  0xf7   :  { %v3385_v40 = vpop.f32.mrb[0].mxu1  ;;  %v3364_v42 = vpop.f32.mrb[1].mxu0 }
  0xf8   :  { %v3365_v44 = vadd.f32 %v3364_v42, %v3363_v38  ;;  %v3386_v45 = vpop.f32.mrb[1].mxu1  ;;  %v3366_v48 = vpop.f32.mrb[2].mxu0  ;;  %3666 = vmatpush3.bf16.msra.mxu0 %v3976_v61 }
  0xf9   :  { %v3387_v47 = vadd.f32 %v3386_v45, %v3385_v40  ;;  %v3388_v50 = vpop.f32.mrb[2].mxu1  ;;  %v3367_v53 = vpop.f32.mrb[3].mxu0  ;;  %3688 = vmatpush3.bf16.msra.mxu1 %v3977_v63  ;;  %3667 = vmatprep.subr.bf16.mxu0 %v3978_v1 }
  0xfa   :  { %v2303_v54 = vadd.f32 %v3365_v44, %v3049_v52  ;;  %v3368_v56 = vadd.f32 %v3367_v53, %v3366_v48  ;;  %v3389_v57 = vpop.f32.mrb[3].mxu1  ;;  %3689 = vmatprep.subr.bf16.mxu1 %v3979_v2  ;;  %v3989_v53 = vld [vmem:[%s4929_s3 + $0x18] sm:$0xff]   ;;  %v3990_v2 = vld [vmem:[%s4929_s3 + $0x20] sm:$0xff]  }
  0xfb   :  { %v3390_v59 = vadd.f32 %v3389_v57, %v3388_v50  ;;  %v3986_v50 = vld [vmem:[%s4929_s3] sm:$0xff]  }
  0xfc   :  { %v2344_v60 = vadd.f32 %v3387_v47, %v2303_v54  ;;  %v2306_v62 = vadd.f32 %v3368_v56, %v3049_v52  ;;  %3668 = vmatpush3.bf16.msra.mxu0 %v3980_v3  ;;  %v3988_v52 = vld [vmem:[%s4929_s3 + $0x10] sm:$0xff]  }
  0xfd   :  { %3690 = vmatpush3.bf16.msra.mxu1 %v3981_v4  ;;  %3669 = vmatprep.subr.bf16.mxu0 %v3982_v5 }
  0xfe   :  { %v2347_v0 = vadd.f32 %v3390_v59, %v2306_v62  ;;  %3691 = vmatprep.subr.bf16.mxu1 %v3983_v6 }
 0x100   :  { %3670 = vmatpush3.bf16.msra.mxu0 %v3984_v7  ;;  %v3991_v7 = vld [vmem:[%s4929_s3 + $0x28] sm:$0xff]  }
 0x101   :  { %3692 = vmatpush3.bf16.msra.mxu1 %v3985_v8  ;;  %3708 = vmatprep.subr.bf16.mxu0 %v3994_v49  ;;  %v3992_v8 = vld [vmem:[%s4929_s3 + $0x30] sm:$0xff]  }
 0x103   :  { %2875 = vmatmul.mubr.bf16.vlgmr.msra.gmra.mrb[28].mxu0 %v3078_v13 }
 0x104   :  { %2916 = vmatmul.mubr.bf16.vlgmr.msra.gmra.mrb[28].mxu1 %v3080_v15  ;;  %3709 = vmatpush3.bf16.msra.mxu0 %v3986_v50 }
 0x105   :  { %3710 = vmatprep.subr.bf16.mxu0 %v3994_v49  ;;  %3724 = vmatprep.mubr.msk.bf16.mxu0 %vm3995_vm0, %v3994_v49 }
 0x108   :  { %3711 = vmatpush3.bf16.msra.mxu0 %v3987_v51 }
 0x109   :  { %3712 = vmatprep.subr.bf16.mxu0 %v3994_v49 }
 0x10c   :  { %3713 = vmatpush3.bf16.msra.mxu0 %v3988_v52 }
 0x10d   :  { %3714 = vmatprep.subr.bf16.mxu0 %v3994_v49 }
 0x110   :  { %3715 = vmatpush3.bf16.msra.mxu0 %v3989_v53 }
 0x111   :  { %3716 = vmatprep.subr.bf16.mxu0 %v3994_v49 }
 0x114   :  { %3717 = vmatpush3.bf16.msra.mxu0 %v3990_v2 }
 0x115   :  { %3718 = vmatprep.subr.bf16.mxu0 %v3994_v49 }
 0x116   :  { %v3407_v17 = vpop.f32.mrb[4].mxu0 }
 0x117   :  { %v3429_v18 = vpop.f32.mrb[4].mxu1  ;;  %v3408_v19 = vpop.f32.mrb[5].mxu0 }
 0x118   :  { %v3409_v20 = vadd.f32 %v3408_v19, %v3407_v17  ;;  %v3430_v21 = vpop.f32.mrb[5].mxu1  ;;  %v3410_v22 = vpop.f32.mrb[6].mxu0  ;;  %3719 = vmatpush3.bf16.msra.mxu0 %v3991_v7 }
 0x119   :  { %v3431_v23 = vadd.f32 %v3430_v21, %v3429_v18  ;;  %v3432_v24 = vpop.f32.mrb[6].mxu1  ;;  %v3411_v25 = vpop.f32.mrb[7].mxu0  ;;  %3720 = vmatprep.subr.bf16.mxu0 %v3994_v49 }
 0x11a   :  { %v2385_v26 = vadd.f32 %v3409_v20, %v2344_v60  ;;  %v3412_v27 = vadd.f32 %v3411_v25, %v3410_v22  ;;  %v3433_v28 = vpop.f32.mrb[7].mxu1 }
 0x11b   :  { %v3434_v29 = vadd.f32 %v3433_v28, %v3432_v24 }
 0x11c   :  { %v2426_v30 = vadd.f32 %v3431_v23, %v2385_v26  ;;  %v2388_v31 = vadd.f32 %v3412_v27, %v2347_v0  ;;  %3721 = vmatpush3.bf16.msra.mxu0 %v3992_v8 }
 0x11d   :  { %3722 = vmatprep.subr.bf16.mxu0 %v3994_v49 }
 0x11e   :  { %v2429_v32 = vadd.f32 %v3434_v29, %v2388_v31 }
 0x120   :  { %3723 = vmatpush3.bf16.msra.mxu0 %v3993_v9 }
 0x136   :  { %v3451_v33 = vpop.f32.mrb[8].mxu0 }
 0x137   :  { %v3473_v34 = vpop.f32.mrb[8].mxu1  ;;  %v3452_v35 = vpop.f32.mrb[9].mxu0 }
 0x138   :  { %v3474_v36 = vpop.f32.mrb[9].mxu1  ;;  %v3453_v37 = vadd.f32 %v3452_v35, %v3451_v33  ;;  %v3454_v39 = vpop.f32.mrb[10].mxu0 }
 0x139   :  { %v3475_v38 = vadd.f32 %v3474_v36, %v3473_v34  ;;  %v3476_v40 = vpop.f32.mrb[10].mxu1  ;;  %v3455_v41 = vpop.f32.mrb[11].mxu0 }
 0x13a   :  { %v3477_v42 = vpop.f32.mrb[11].mxu1  ;;  %v2467_v43 = vadd.f32 %v3453_v37, %v2426_v30  ;;  %v3456_v44 = vadd.f32 %v3455_v41, %v3454_v39 }
 0x13b   :  { %v3478_v45 = vadd.f32 %v3477_v42, %v3476_v40 }
 0x13c   :  { %v2508_v46 = vadd.f32 %v3475_v38, %v2467_v43  ;;  %v2470_v47 = vadd.f32 %v3456_v44, %v2429_v32 }
 0x13e   :  { %v2511_v48 = vadd.f32 %v3478_v45, %v2470_v47 }
 0x156   :  { %v3495_v54 = vpop.f32.mrb[12].mxu0 }
 0x157   :  { %v3517_v55 = vpop.f32.mrb[12].mxu1  ;;  %v3496_v56 = vpop.f32.mrb[13].mxu0 }
 0x158   :  { %v3497_v57 = vadd.f32 %v3496_v56, %v3495_v54  ;;  %v3518_v58 = vpop.f32.mrb[13].mxu1  ;;  %v3498_v59 = vpop.f32.mrb[14].mxu0 }
 0x159   :  { %v3519_v60 = vadd.f32 %v3518_v58, %v3517_v55  ;;  %v3520_v61 = vpop.f32.mrb[14].mxu1  ;;  %v3499_v62 = vpop.f32.mrb[15].mxu0 }
 0x15a   :  { %v2549_v63 = vadd.f32 %v3497_v57, %v2508_v46  ;;  %v3500_v0 = vadd.f32 %v3499_v62, %v3498_v59  ;;  %v3521_v1 = vpop.f32.mrb[15].mxu1 }
 0x15b   :  { %v3522_v3 = vadd.f32 %v3521_v1, %v3520_v61 }
 0x15c   :  { %v2590_v4 = vadd.f32 %v3519_v60, %v2549_v63  ;;  %v2552_v5 = vadd.f32 %v3500_v0, %v2511_v48 }
 0x15e   :  { %v2593_v6 = vadd.f32 %v3522_v3, %v2552_v5 }
 0x176   :  { %v3539_v10 = vpop.f32.mrb[16].mxu0 }
 0x177   :  { %v3561_v11 = vpop.f32.mrb[16].mxu1  ;;  %v3540_v12 = vpop.f32.mrb[17].mxu0 }
 0x178   :  { %v3541_v13 = vadd.f32 %v3540_v12, %v3539_v10  ;;  %v3562_v14 = vpop.f32.mrb[17].mxu1  ;;  %v3542_v15 = vpop.f32.mrb[18].mxu0 }
 0x179   :  { %v3563_v16 = vadd.f32 %v3562_v14, %v3561_v11  ;;  %v3564_v17 = vpop.f32.mrb[18].mxu1  ;;  %v3543_v18 = vpop.f32.mrb[19].mxu0 }
 0x17a   :  { %v2631_v19 = vadd.f32 %v3541_v13, %v2590_v4  ;;  %v3544_v20 = vadd.f32 %v3543_v18, %v3542_v15  ;;  %v3565_v21 = vpop.f32.mrb[19].mxu1  ;;  %v3338_v15 = vld [vmem:[%s4930_s4] ss:$0 sm:$0xff] }
 0x17b   :  { %v3566_v22 = vadd.f32 %v3565_v21, %v3564_v17 }
 0x17c   :  { %v2672_v23 = vadd.f32 %v3563_v16, %v2631_v19  ;;  %v2634_v24 = vadd.f32 %v3544_v20, %v2593_v6 }
 0x17e   :  { %v2675_v25 = vadd.f32 %v3566_v22, %v2634_v24 }
 0x196   :  { %v3583_v26 = vpop.f32.mrb[20].mxu0 }
 0x197   :  { %v3605_v27 = vpop.f32.mrb[20].mxu1  ;;  %v3584_v28 = vpop.f32.mrb[21].mxu0 }
 0x198   :  { %v3606_v29 = vpop.f32.mrb[21].mxu1  ;;  %v3585_v30 = vadd.f32 %v3584_v28, %v3583_v26  ;;  %v3586_v32 = vpop.f32.mrb[22].mxu0 }
 0x199   :  { %v3607_v31 = vadd.f32 %v3606_v29, %v3605_v27  ;;  %v3608_v33 = vpop.f32.mrb[22].mxu1  ;;  %v3587_v34 = vpop.f32.mrb[23].mxu0 }
 0x19a   :  { %v3609_v35 = vpop.f32.mrb[23].mxu1  ;;  %v2713_v36 = vadd.f32 %v3585_v30, %v2672_v23  ;;  %v3588_v37 = vadd.f32 %v3587_v34, %v3586_v32 }
 0x19b   :  { %v3610_v38 = vadd.f32 %v3609_v35, %v3608_v33 }
 0x19c   :  { %v2754_v39 = vadd.f32 %v3607_v31, %v2713_v36  ;;  %v2716_v40 = vadd.f32 %v3588_v37, %v2675_v25 }
 0x19e   :  { %v2757_v41 = vadd.f32 %v3610_v38, %v2716_v40 }
 0x1b6   :  { %v3627_v42 = vpop.f32.mrb[24].mxu0 }
 0x1b7   :  { %v3649_v43 = vpop.f32.mrb[24].mxu1  ;;  %v3628_v44 = vpop.f32.mrb[25].mxu0 }
 0x1b8   :  { %v3629_v45 = vadd.f32 %v3628_v44, %v3627_v42  ;;  %v3650_v46 = vpop.f32.mrb[25].mxu1  ;;  %v3630_v47 = vpop.f32.mrb[26].mxu0 }
 0x1b9   :  { %v3651_v48 = vadd.f32 %v3650_v46, %v3649_v43  ;;  %v3652_v49 = vpop.f32.mrb[26].mxu1  ;;  %v3631_v50 = vpop.f32.mrb[27].mxu0 }
 0x1ba   :  { %v2795_v51 = vadd.f32 %v3629_v45, %v2754_v39  ;;  %v3632_v52 = vadd.f32 %v3631_v50, %v3630_v47  ;;  %v3653_v53 = vpop.f32.mrb[27].mxu1 }
 0x1bb   :  { %v3654_v54 = vadd.f32 %v3653_v53, %v3652_v49 }
 0x1bc   :  { %v2836_v55 = vadd.f32 %v3651_v48, %v2795_v51  ;;  %v2798_v56 = vadd.f32 %v3632_v52, %v2757_v41 }
 0x1be   :  { %v2839_v57 = vadd.f32 %v3654_v54, %v2798_v56 }
 0x1d6   :  { %v3671_v58 = vpop.f32.mrb[28].mxu0 }
 0x1d7   :  { %v3693_v59 = vpop.f32.mrb[28].mxu1  ;;  %v3672_v60 = vpop.f32.mrb[29].mxu0 }
 0x1d8   :  { %v3694_v61 = vpop.f32.mrb[29].mxu1  ;;  %v3673_v62 = vadd.f32 %v3672_v60, %v3671_v58  ;;  %v3674_v0 = vpop.f32.mrb[30].mxu0 }
 0x1d9   :  { %v3695_v63 = vadd.f32 %v3694_v61, %v3693_v59  ;;  %v3696_v1 = vpop.f32.mrb[30].mxu1  ;;  %v3675_v2 = vpop.f32.mrb[31].mxu0 }
 0x1da   :  { %v3697_v3 = vpop.f32.mrb[31].mxu1  ;;  %v2877_v4 = vadd.f32 %v3673_v62, %v2836_v55  ;;  %v3676_v5 = vadd.f32 %v3675_v2, %v3674_v0 }
 0x1db   :  { %v3698_v6 = vadd.f32 %v3697_v3, %v3696_v1 }
 0x1dc   :  { %v2918_v7 = vadd.f32 %v3695_v63, %v2877_v4  ;;  %v2880_v8 = vadd.f32 %v3676_v5, %v2839_v57 }
 0x1de   :  { %v2926_v9 = vmul.f32 0.1, %v2918_v7  ;;  %v2921_v10 = vadd.f32 %v3698_v6, %v2880_v8  ;;  %vm2924_vm1 = vcmp.ge.f32.partialorder %v2918_v7, 0.0 }
 0x1e0   :  { %vm2925_vm2 = vcmp.ge.f32.partialorder %v2921_v10, 0.0  ;;  %v2927_v11 = vmul.f32 0.1, %v2921_v10  ;;  %v2928_v12 = vsel %vm2924_vm1, %v2918_v7, %v2926_v9 }
 0x1e2   :  { %v2929_v13 = vsel %vm2925_vm2, %v2921_v10, %v2927_v11 }
 0x1e3   :  { %v2930_v14 = vpack.c.bf16 %v2929_v13, %v2928_v12 }
 0x1e5   :  { %3725 = vmatmul.mubr.bf16.vlgmr.msra.gmra.mrb[32].mxu0 %v2930_v14 }
 0x2b8   :  { %v3036_v16 = vpop.f32.mrb[32].mxu0 }
 0x2b9   :  { %v3037_v17 = vadd.f32 %v3338_v15, %v3036_v16  ;;  %v3726_v18 = vpop.f32.mrb[33].mxu0 }
 0x2ba   :  { %v3039_v19 = vpop.f32.mrb[34].mxu0 }
 0x2bb   :  { %3043 = vst [vmem:[%s4931_s5] sm:$0xff] %v3037_v17  ;;  %v3040_v20 = vadd.f32 %v3338_v15, %v3039_v19  ;;  %v3727_v21 = vpop.f32.mrb[35].mxu0 }
 0x2bd   :  { %3044 = vst [vmem:[%s4931_s5 + $0x8] sm:$0xff] %v3040_v20 }

</bundles_post_ra>
